<compile_context>
chip_gen: v7x
topology: tpu7x:2x2x1
jax: 0.10.0
libtpu: 0.0.40
codegen_flags: <defaults>
</compile_context>

<pallas_src>
import jax
import jax.numpy as jnp
from jax.experimental import pallas as pl
from jax.experimental.pallas import tpu as pltpu


_LANE = 128       # f32 lane width
_SUBLANE = 8      # f32 sublane height


def _round_down(v, m):
    return max(m, (v // m) * m)


def _vmem_capacity_bytes():
    """Per-core VMEM capacity; conservative fallback if the query is unavailable."""
    try:
        return int(pltpu.get_tpu_info().vmem_capacity_bytes)
    except Exception:
        return 64 * 1024 * 1024   # v7x per-TensorCore size (smallest current gen)


def _footprint_bytes(tb, td, S, Din, W, x_isz, w_isz, out_isz):
    """Double-buffered VMEM bytes for one grid step's operands."""
    x_b = tb * S * Din * x_isz
    w_b = W * Din * td * w_isz
    o_b = tb * td * out_isz
    b_b = td * 4
    return 2 * (x_b + w_b + o_b + b_b)   # Pallas double-buffers every spec'd operand


def _pick_tiles(B, S, Din, Dout, W, x_isz, w_isz, out_isz, vmem_cap):
    """Pick (batch_tile, out_channel_tile): layout-legal, budget-checked AFTER rounding."""
    budget = int(vmem_cap * 0.55)         # leave headroom for compiler scratch

    # Out-channel tile: lane axis of weight/bias/out blocks.
    if Dout <= _LANE:
        td = Dout                          # full extent is always legal
    else:
        td = _round_down(min(Dout, 1024), _LANE)
    # Batch tile: sublane axis of x/out blocks.
    if B <= _SUBLANE:
        tb = B
    else:
        tb = _round_down(min(B, 512), _SUBLANE)

    # Shrink until the actual (post-rounding) double-buffered footprint fits.
    while _footprint_bytes(tb, td, S, Din, W, x_isz, w_isz, out_isz) > budget and td > _LANE:
        td = _round_down(td // 2, _LANE)
    while _footprint_bytes(tb, td, S, Din, W, x_isz, w_isz, out_isz) > budget and tb > _SUBLANE:
        tb = _round_down(tb // 2, _SUBLANE)

    # Keep at least 2 grid steps on a parallel axis when possible so a
    # two-TensorCore part (v7x) can shard the grid instead of idling one core.
    if pl.cdiv(Dout, td) == 1 and pl.cdiv(B, tb) == 1:
        if Dout >= 2 * _LANE:
            td = _round_down(max(_LANE, td // 2), _LANE)
        elif B >= 2 * _SUBLANE:
            tb = _round_down(max(_SUBLANE, tb // 2), _SUBLANE)

    return tb, td


def _seqnet_kernel(x_ref, w_ref, b_ref, o_ref):
    """One (out-channel-tile, batch-tile) block of valid Conv1d + temporal mean.

    x_ref: (TB, S, Din)     input tile
    w_ref: (W*Din, TD)      fused conv weight (pre-reshaped in seqnet_prepare)
    b_ref: (1, TD)          conv bias (f32)
    o_ref: (TB, TD)         output tile
    """
    S, Din = x_ref.shape[1], x_ref.shape[2]
    W = w_ref.shape[0] // Din
    L = S - W + 1                          # number of valid conv positions (static)
    inv_L = 1.0 / L

    x = x_ref[...].astype(jnp.float32)     # cheap VPU adds, exact f32 window sums
    ws = jnp.sum(x[:, 0:L, :], axis=1)     # (TB, Din) window sum for tap 0
    sums = [ws]
    for k in range(1, W):                  # rolling recurrence: L + 2*(W-1) adds total
        ws = ws - x[:, k - 1, :] + x[:, k + L - 1, :]
        sums.append(ws)
    # Stack taps along the contraction axis -> one fused MXU matmul, operands at
    # the weight dtype (no f32 upcast), f32 accumulation on the MXU.
    lhs = jnp.concatenate(sums, axis=-1).astype(w_ref.dtype)            # (TB, W*Din)
    acc = jnp.dot(lhs, w_ref[...], preferred_element_type=jnp.float32)  # (TB, TD)
    o_ref[...] = (acc * inv_L + b_ref[...]).astype(o_ref.dtype)


def seqnet_prepare(weight: jax.Array, bias: jax.Array, *, param_dtype=None):
    """One-time parameter layout prep (hoisted out of the forward path).

    weight: (outDims, inDims, w) -> (w*inDims, outDims) fused matmul RHS
    bias:   (outDims,)           -> (1, outDims) f32
    param_dtype=jnp.bfloat16 streams weights at half the HBM bytes (precision tradeoff).
    """
    Dout, Din, W = weight.shape
    if param_dtype is not None:
        weight = weight.astype(param_dtype)
    w_fused = jnp.transpose(weight, (2, 1, 0)).reshape(W * Din, Dout)
    b2 = bias.reshape(1, Dout).astype(jnp.float32)
    return w_fused, b2


def seqnet_forward(x: jax.Array, w_fused: jax.Array, bias2: jax.Array,
                   *, tb: int | None = None, td: int | None = None) -> jax.Array:
    """x: (B, seqL, inDims); w_fused/bias2 from seqnet_prepare. Returns (B, outDims)."""
    if x.ndim < 3:
        # mirrors torch's x.unsqueeze(1); only meaningful when the conv width is 1
        x = x[:, None, :]
    B, S, Din = x.shape
    WD, Dout = w_fused.shape
    assert WD % Din == 0, (WD, Din)
    W = WD // Din
    assert S >= W, "sequence length must be >= conv kernel width"

    x_isz = jnp.dtype(x.dtype).itemsize
    w_isz = jnp.dtype(w_fused.dtype).itemsize
    out_isz = x_isz
    vmem_cap = _vmem_capacity_bytes()

    auto_tb, auto_td = _pick_tiles(B, S, Din, Dout, W, x_isz, w_isz, out_isz, vmem_cap)
    tb = auto_tb if tb is None else tb
    td = auto_td if td is None else td

    need = _footprint_bytes(tb, td, S, Din, W, x_isz, w_isz, out_isz)
    vmem_limit = int(min(0.9 * vmem_cap, max(32 * 1024 * 1024, need + 8 * 1024 * 1024)))

    # Out-channel tile is the OUTER grid axis, batch tile the INNER one: the
    # weight block index (0, j) is unchanged across the inner batch sweep, so
    # Pallas keeps the weight tile resident and only re-streams the small x tile.
    grid = (pl.cdiv(Dout, td), pl.cdiv(B, tb))
    return pl.pallas_call(
        _seqnet_kernel,
        out_shape=jax.ShapeDtypeStruct((B, Dout), x.dtype),
        grid=grid,
        in_specs=[
            pl.BlockSpec((tb, S, Din), lambda j, i: (i, 0, 0)),    # x tile (streamed)
            pl.BlockSpec((W * Din, td), lambda j, i: (0, j)),      # weight tile (resident over i)
            pl.BlockSpec((1, td), lambda j, i: (0, j)),            # bias tile
        ],
        out_specs=pl.BlockSpec((tb, td), lambda j, i: (i, j)),     # lane-dense out tile
        compiler_params=pltpu.CompilerParams(
            # No cross-tile reduction: both axes independent -> megacore sharding.
            dimension_semantics=("parallel", "parallel"),
            vmem_limit_bytes=vmem_limit,
        ),
    )(x, w_fused, bias2)


def seqnet_ref(x, weight, bias):
    """Pure-JAX reference: permute + valid Conv1d + mean over positions."""
    B, S, Din = x.shape
    Dout, _, W = weight.shape
    L = S - W + 1
    windows = jnp.stack([x[:, t:t + W, :] for t in range(L)], axis=1)  # (B, L, W, Din)
    y = jnp.einsum("btkc,ock->bto", windows, weight,
                   precision=jax.lax.Precision.HIGHEST)
    y = y + bias[None, None, :]
    return jnp.mean(y, axis=1)


if __name__ == "__main__":
    key = jax.random.PRNGKey(0)
    k1, k2, k3, k4, k5, k6 = jax.random.split(key, 6)

    # Small config consistent with the module: batch=2, seqL=8, inDims=32,
    # outDims=32, conv width w=5 (the nn.Conv1d kernel_size in the spec).
    B, S, Din, Dout, W = 2, 8, 32, 32, 5
    x = jax.random.normal(k1, (B, S, Din), jnp.float32)
    weight = 0.1 * jax.random.normal(k2, (Dout, Din, W), jnp.float32)
    bias = 0.1 * jax.random.normal(k3, (Dout,), jnp.float32)

    w_fused, b2 = seqnet_prepare(weight, bias)          # one-time layout prep
    out = jax.block_until_ready(seqnet_forward(x, w_fused, b2))
    ref = seqnet_ref(x, weight, bias)
    assert out.shape == (B, Dout)
    assert jnp.allclose(out, ref, atol=5e-3, rtol=5e-3), \
        float(jnp.max(jnp.abs(out - ref)))

    # Slightly larger shapes that exercise the tiled multi-program path
    # (grid = (2, 2): out-channels tiled by 128 lanes OUTER, batch by 8 sublanes INNER).
    B2, D2 = 16, 256
    x2 = jax.random.normal(k4, (B2, S, Din), jnp.float32)
    w2 = 0.1 * jax.random.normal(k5, (D2, Din, W), jnp.float32)
    bb2 = 0.1 * jax.random.normal(k6, (D2,), jnp.float32)
    w2_fused, b2_2 = seqnet_prepare(w2, bb2)
    out2 = jax.block_until_ready(seqnet_forward(x2, w2_fused, b2_2, tb=8, td=128))
    ref2 = seqnet_ref(x2, w2, bb2)
    assert out2.shape == (B2, D2)
    assert jnp.allclose(out2, ref2, atol=5e-3, rtol=5e-3), \
        float(jnp.max(jnp.abs(out2 - ref2)))

    print("KERNEL_OK")
</pallas_src>

<mosaic_0001>
module attributes {stable_mosaic.version = 11 : i64} {
  func.func @_seqnet_kernel(%arg0: i32, %arg1: i32, %arg2: memref<2x8x32xf32, #tpu.memory_space<vmem>>, %arg3: memref<160x32xf32, #tpu.memory_space<vmem>>, %arg4: memref<1x32xf32, #tpu.memory_space<vmem>>, %arg5: memref<2x32xf32, #tpu.memory_space<vmem>>) attributes {dimension_semantics = [#tpu.dimension_semantics<parallel>, #tpu.dimension_semantics<parallel>], iteration_bounds = array<i64: 1, 1>, scalar_prefetch = 0 : i64, scratch_operands = 0 : i64, tpu.core_type = #tpu.core_type<tc>, window_params = [{transform_indices = @transform_0, window_bounds = array<i64: 2, 8, 32>}, {transform_indices = @transform_1, window_bounds = array<i64: 160, 32>}, {transform_indices = @transform_2, window_bounds = array<i64: 1, 32>}, {transform_indices = @transform_3, window_bounds = array<i64: 2, 32>}]} {
    %c0 = arith.constant 0 : index
    %c0_0 = arith.constant 0 : index
    %c0_1 = arith.constant 0 : index
    %0 = vector.load %arg2[%c0, %c0_0, %c0_1] : memref<2x8x32xf32, #tpu.memory_space<vmem>>, vector<2x8x32xf32>
    %1 = vector.extract_strided_slice %0 {offsets = [0, 0, 0], sizes = [2, 4, 32], strides = [1, 1, 1]} : vector<2x8x32xf32> to vector<2x4x32xf32>
    %cst = arith.constant dense<0.000000e+00> : vector<2x32xf32>
    %2 = vector.multi_reduction <add>, %1, %cst [1] : vector<2x4x32xf32> to vector<2x32xf32>
    %3 = vector.extract_strided_slice %0 {offsets = [0, 0, 0], sizes = [2, 1, 32], strides = [1, 1, 1]} : vector<2x8x32xf32> to vector<2x1x32xf32>
    %4 = vector.shape_cast %3 : vector<2x1x32xf32> to vector<2x32xf32>
    %5 = arith.subf %2, %4 : vector<2x32xf32>
    %6 = vector.extract_strided_slice %0 {offsets = [0, 4, 0], sizes = [2, 1, 32], strides = [1, 1, 1]} : vector<2x8x32xf32> to vector<2x1x32xf32>
    %7 = vector.shape_cast %6 : vector<2x1x32xf32> to vector<2x32xf32>
    %8 = arith.addf %5, %7 : vector<2x32xf32>
    %9 = vector.extract_strided_slice %0 {offsets = [0, 1, 0], sizes = [2, 1, 32], strides = [1, 1, 1]} : vector<2x8x32xf32> to vector<2x1x32xf32>
    %10 = vector.shape_cast %9 : vector<2x1x32xf32> to vector<2x32xf32>
    %11 = arith.subf %8, %10 : vector<2x32xf32>
    %12 = vector.extract_strided_slice %0 {offsets = [0, 5, 0], sizes = [2, 1, 32], strides = [1, 1, 1]} : vector<2x8x32xf32> to vector<2x1x32xf32>
    %13 = vector.shape_cast %12 : vector<2x1x32xf32> to vector<2x32xf32>
    %14 = arith.addf %11, %13 : vector<2x32xf32>
    %15 = vector.extract_strided_slice %0 {offsets = [0, 2, 0], sizes = [2, 1, 32], strides = [1, 1, 1]} : vector<2x8x32xf32> to vector<2x1x32xf32>
    %16 = vector.shape_cast %15 : vector<2x1x32xf32> to vector<2x32xf32>
    %17 = arith.subf %14, %16 : vector<2x32xf32>
    %18 = vector.extract_strided_slice %0 {offsets = [0, 6, 0], sizes = [2, 1, 32], strides = [1, 1, 1]} : vector<2x8x32xf32> to vector<2x1x32xf32>
    %19 = vector.shape_cast %18 : vector<2x1x32xf32> to vector<2x32xf32>
    %20 = arith.addf %17, %19 : vector<2x32xf32>
    %21 = vector.extract_strided_slice %0 {offsets = [0, 3, 0], sizes = [2, 1, 32], strides = [1, 1, 1]} : vector<2x8x32xf32> to vector<2x1x32xf32>
    %22 = vector.shape_cast %21 : vector<2x1x32xf32> to vector<2x32xf32>
    %23 = arith.subf %20, %22 : vector<2x32xf32>
    %24 = vector.extract_strided_slice %0 {offsets = [0, 7, 0], sizes = [2, 1, 32], strides = [1, 1, 1]} : vector<2x8x32xf32> to vector<2x1x32xf32>
    %25 = vector.shape_cast %24 : vector<2x1x32xf32> to vector<2x32xf32>
    %26 = arith.addf %23, %25 : vector<2x32xf32>
    %27 = tpu.concatenate %2, %8, %14, %20, %26 in 1 : vector<2x32xf32>, vector<2x32xf32>, vector<2x32xf32>, vector<2x32xf32>, vector<2x32xf32> -> vector<2x160xf32>
    %c0_2 = arith.constant 0 : index
    %c0_3 = arith.constant 0 : index
    %28 = vector.load %arg3[%c0_2, %c0_3] : memref<160x32xf32, #tpu.memory_space<vmem>>, vector<160x32xf32>
    %cst_4 = arith.constant dense<0.000000e+00> : vector<2x32xf32>
    %29 = tpu.matmul %27, %28, %cst_4 {dimension_numbers = #tpu.dot_dimension_numbers<[1], [0], [0], [1], [0, 0, 1, 1], [], []>} : vector<2x160xf32>, vector<160x32xf32>, vector<2x32xf32> -> vector<2x32xf32>
    %cst_5 = arith.constant 2.500000e-01 : f32
    %30 = vector.broadcast %cst_5 : f32 to vector<2x32xf32>
    %31 = arith.mulf %29, %30 : vector<2x32xf32>
    %c0_6 = arith.constant 0 : index
    %c0_7 = arith.constant 0 : index
    %32 = vector.load %arg4[%c0_6, %c0_7] : memref<1x32xf32, #tpu.memory_space<vmem>>, vector<1x32xf32>
    %33 = vector.broadcast %32 : vector<1x32xf32> to vector<2x32xf32>
    %34 = arith.addf %31, %33 : vector<2x32xf32>
    %c0_8 = arith.constant 0 : index
    %c0_9 = arith.constant 0 : index
    %35 = vector.load %arg5[%c0_8, %c0_9] : memref<2x32xf32, #tpu.memory_space<vmem>>, vector<2x32xf32>
    tpu.vector_store %arg5[%c0_8, %c0_9], %34 {strides = array<i32>} : memref<2x32xf32, #tpu.memory_space<vmem>>, vector<2x32xf32>,
    return
  }
  func.func @transform_0(%arg0: i32, %arg1: i32) -> (i32, i32, i32) {
    %c0_i32 = arith.constant 0 : i32
    %c0_i32_0 = arith.constant 0 : i32
    %c0_i32_1 = arith.constant 0 : i32
    return %arg1, %c0_i32, %c0_i32_0 : i32, i32, i32
  }
  func.func @transform_1(%arg0: i32, %arg1: i32) -> (i32, i32) {
    %c0_i32 = arith.constant 0 : i32
    %c0_i32_0 = arith.constant 0 : i32
    return %c0_i32, %arg0 : i32, i32
  }
  func.func @transform_2(%arg0: i32, %arg1: i32) -> (i32, i32) {
    %c0_i32 = arith.constant 0 : i32
    %c0_i32_0 = arith.constant 0 : i32
    return %c0_i32, %arg0 : i32, i32
  }
  func.func @transform_3(%arg0: i32, %arg1: i32) -> (i32, i32) {
    %c0_i32 = arith.constant 0 : i32
    return %arg1, %arg0 : i32, i32
  }
}

</mosaic_0001>

<bundles_post_ra>
// kernel: tpu_custom_call.1
= control target key start
LH: loop header
LB: loop body
LE: loop exit
PB: predicated region body
PF: predicated region fallthrough
CT: control target
= control target key end

     0   :  { %vm17_vm0 = vcmask 257024   ;;  %v292_v15 = vmov 0.0|0.0   ;;  %s438_s0 = inlined_call_operand.vmem [shape: f32[2,8,32], index: 0, kind: input, shape index: {}]   ;;  %s439_s1 = inlined_call_operand.vmem [shape: f32[160,32], index: 1, kind: input, shape index: {}]   ;;  %s440_s2 = inlined_call_operand.vmem [shape: f32[1,32], index: 2, kind: input, shape index: {}]   ;;  %s441_s3 = inlined_call_operand.hbm [shape: f32[2,32], index: 3, kind: output, shape index: {}]  }
   0x1   :  { %v320_v0 = vld [vmem:[%s438_s0] sm:$0xff]  ;;  %v325_v1 = vld [vmem:[%s438_s0 + $0x8] sm:$0xff]  ;;  %v116_v10 = vld [vmem:[%s439_s1 + $0x10] sm:$0xff]  ;;  %233 = vmatprep.subr.bf16.mxu0 %v292_v15 }
   0x2   :  { %v18_v2 = vsel %vm17_vm0, %v320_v0, 0.0  ;;  %v25_v3 = vsel %vm17_vm0, %v325_v1, 0.0  ;;  %v114_v6 = vld [vmem:[%s439_s1] sm:$0xff]  ;;  %v115_v7 = vld [vmem:[%s439_s1 + $0x8] sm:$0xff]  ;;  %v117_v11 = vld [vmem:[%s439_s1 + $0x18] sm:$0xff] }
   0x3   :  { %v19_v4 = vrot.slane %v18_v2, 4  ;;  %v26_v5 = vrot.slane %v25_v3, 4  ;;  %v234_v12 = vpack.c.bf16 %v115_v7, %v114_v6  ;;  %v237_v16 = vpack.c.bf16 %v117_v11, %v116_v10  ;;  %v118_v19 = vld [vmem:[%s439_s1 + $0x20] sm:$0xff]  ;;  %v119_v20 = vld [vmem:[%s439_s1 + $0x28] sm:$0xff] }
   0x5   :  { %v20_v8 = vadd.f32 %v19_v4, %v18_v2  ;;  %v27_v9 = vadd.f32 %v26_v5, %v25_v3  ;;  %235 = vmatpush1.bf16.msra.mxu0 %v234_v12 }
   0x6   :  { %236 = vmatprep.subr.bf16.mxu0 %v292_v15 }
   0x7   :  { %v21_v13 = vrot.slane %v20_v8, 2  ;;  %v28_v14 = vrot.slane %v27_v9, 2 }
   0x9   :  { %v22_v17 = vadd.f32 %v21_v13, %v20_v8  ;;  %v29_v18 = vadd.f32 %v28_v14, %v27_v9 }
   0xa   :  { %8 = vsyncpa [#allocation3], 0  ;;  %238 = vmatpush1.bf16.msra.mxu0 %v237_v16  ;;  %v240_v23 = vpack.c.bf16 %v119_v20, %v118_v19  ;;  %v36_v26 = vrot.slane %v320_v0, 4  ;;  %v37_v27 = vrot.slane %v325_v1, 4  ;;  %v120_v28 = vld [vmem:[%s439_s1 + $0x30] sm:$0xff]  ;;  %v121_v29 = vld [vmem:[%s439_s1 + $0x38] sm:$0xff] }
   0xb   :  { %v23_v21 = vrot.slane %v22_v17, 1  ;;  %v30_v22 = vrot.slane %v29_v18, 1  ;;  %239 = vmatprep.subr.bf16.mxu0 %v292_v15  ;;  %v42_v30 = vrot.slane %v320_v0, 1  ;;  %vm80_vm1 = vcmask 1041409   ;;  %v122_v40 = vld [vmem:[%s439_s1 + $0x40] sm:$0xff]  ;;  %v123_v41 = vld [vmem:[%s439_s1 + $0x48] sm:$0xff] }
   0xc   :  { %v43_v33 = vrot.slane %v325_v1, 1  ;;  %v243_v35 = vpack.c.bf16 %v121_v29, %v120_v28  ;;  %v48_v38 = vrot.slane %v320_v0, 5  ;;  %v49_v39 = vrot.slane %v325_v1, 5  ;;  %v124_v53 = vld [vmem:[%s439_s1 + $0x50] sm:$0xff]  ;;  %v125_v54 = vld [vmem:[%s439_s1 + $0x58] sm:$0xff]  ;;  %s293_s12 = smov 32  }
   0xd   :  { %v24_v24 = vadd.f32 %v23_v21, %v22_v17  ;;  %v31_v25 = vadd.f32 %v30_v22, %v29_v18  ;;  %v54_v42 = vrot.slane %v320_v0, 2  ;;  %v55_v46 = vrot.slane %v325_v1, 2  ;;  %v126_v3 = vld [vmem:[%s439_s1 + $0x60] sm:$0xff]  ;;  %v127_v4 = vld [vmem:[%s439_s1 + $0x68] sm:$0xff]  ;;  %s294_s17 = smov 64   ;;  %v128_v10 = vld [vmem:[%s439_s1 + $0x70] sm:$0xff] }
   0xe   :  { %241 = vmatpush1.bf16.msra.mxu0 %v240_v23  ;;  %v60_v47 = vrot.slane %v320_v0, 6  ;;  %v246_v48 = vpack.c.bf16 %v123_v41, %v122_v40  ;;  %v61_v52 = vrot.slane %v325_v1, 6  ;;  %v67_v55 = vrot.slane %v325_v1, 3  ;;  %v129_v11 = vld [vmem:[%s439_s1 + $0x78] sm:$0xff]  ;;  %s295_s21 = smov 96   ;;  %v130_v16 = vld [vmem:[%s439_s1 + $0x80] sm:$0xff] }
   0xf   :  { %v32_v31 = vsub.f32 %v24_v24, %v320_v0  ;;  %v33_v32 = vsub.f32 %v31_v25, %v325_v1  ;;  %v363_v34 = vsel %vm80_vm1, %v31_v25, %v24_v24  ;;  %242 = vmatprep.subr.bf16.mxu0 %v292_v15  ;;  %v66_v59 = vrot.slane %v320_v0, 3  ;;  %v131_v17 = vld [vmem:[%s439_s1 + $0x88] sm:$0xff]  ;;  %v132_v20 = vld [vmem:[%s439_s1 + $0x90] sm:$0xff]  ;;  %v133_v21 = vld [vmem:[%s439_s1 + $0x98] sm:$0xff]  ;;  %s296_s1 = smov [#allocation2]  }
  0x10   :  { %v249_v60 = vpack.c.bf16 %v125_v54, %v124_v53  ;;  %v73_v61 = vrot.slane %v325_v1, 7  ;;  %v72_v5 = vrot.slane %v320_v0, 7  ;;  %v252_v8 = vpack.c.bf16 %v127_v4, %v126_v3  ;;  %s223_s5 = sshll.u32 %s296_s1, 4  ;;  %s224_s5 = int_to_ptr.vmem [resolvable:$true] %s223_s5 }
  0x11   :  { %v40_v36 = vadd.f32 %v36_v26, %v32_v31  ;;  %v41_v37 = vadd.f32 %v37_v27, %v33_v32  ;;  %v255_v14 = vpack.c.bf16 %v129_v11, %v128_v10  ;;  %vm108_vm2 = vcmask 261120   ;;  %s268_s6 = scalar_lea.vmem %s224_s5, 32  ;;  %p273_p1 = scmp.lt.s32.totalorder %s224_s5, %s224_s5 }
  0x12   :  { %244 = vmatpush1.bf16.msra.mxu0 %v243_v35  ;;  %v258_v19 = vpack.c.bf16 %v131_v17, %v130_v16  ;;  %v261_v22 = vpack.c.bf16 %v133_v21, %v132_v20  ;;  %vm110_vm3 = vcmask 523264   ;;  %vm112_vm4 = vcmask 785408   ;;  %p269_p0 = scmp.ne.s32.totalorder %s224_s5, %s268_s6  ;;  %p274_p2 = scmp.lt.s32.totalorder %s268_s6, %s268_s6 }
  0x13   :  { %v47_v43 = vsub.f32 %v41_v37, %v43_v33  ;;  %v85_v44 = vrot.slane %v41_v37, 7  ;;  %v46_v45 = vsub.f32 %v40_v36, %v42_v30  ;;  %245 = vmatprep.subr.bf16.mxu0 %v292_v15  ;;  %v232_v30 = vld [vmem:[%s440_s2] ss:$0 sm:$0xff]  ;;  %vm215_vm5 = vcmask 254976  }
  0x14   :  { %p275_p3 = por %p274_p2, %p273_p1 }
  0x15   :  { %v86_v49 = vsel %vm80_vm1, %v85_v44, %v40_v36  ;;  %v52_v50 = vadd.f32 %v48_v38, %v46_v45  ;;  %v53_v51 = vadd.f32 %v49_v39, %v47_v43 }
  0x16   :  { %87 = vrot.lane.b32.xlu0 %v86_v49, %s293_s12  ;;  %247 = vmatpush1.bf16.msra.mxu0 %v246_v48  ;;  %p276_p4 = pnand %p275_p3, %p269_p0 }
  0x17   :  { %v92_v56 = vrot.slane %v53_v51, 7  ;;  %v58_v57 = vsub.f32 %v52_v50, %v54_v42  ;;  %v59_v58 = vsub.f32 %v53_v51, %v55_v46  ;;  %248 = vmatprep.subr.bf16.mxu0 %v292_v15 }
  0x19   :  { %v93_v62 = vsel %vm80_vm1, %v92_v56, %v52_v50  ;;  %v64_v63 = vadd.f32 %v60_v47, %v58_v57  ;;  %v65_v2 = vadd.f32 %v61_v52, %v59_v58 }
  0x1a   :  { %94 = vrot.lane.b32.xlu0 %v93_v62, %s294_s17  ;;  %250 = vmatpush1.bf16.msra.mxu0 %v249_v60 }
  0x1b   :  { %v99_v6 = vrot.slane %v65_v2, 7  ;;  %v70_v1 = vsub.f32 %v64_v63, %v66_v59  ;;  %v71_v7 = vsub.f32 %v65_v2, %v67_v55  ;;  %251 = vmatprep.subr.bf16.mxu0 %v292_v15 }
  0x1d   :  { %v100_v9 = vsel %vm80_vm1, %v99_v6, %v64_v63  ;;  %v76_v0 = vadd.f32 %v72_v5, %v70_v1  ;;  %v77_v12 = vadd.f32 %v73_v61, %v71_v7 }
  0x1e   :  { %101 = vrot.lane.b32.xlu1 %v100_v9, %s295_s21  ;;  %253 = vmatpush1.bf16.msra.mxu0 %v252_v8 }
  0x1f   :  { %v106_v13 = vrot.slane %v77_v12, 7  ;;  %254 = vmatprep.subr.bf16.mxu0 %v292_v15 }
  0x21   :  { %v107_v18 = vsel %vm80_vm1, %v106_v13, %v76_v0 }
  0x22   :  { %231 = vmatprep.mubr.msk.f32.mxu0 %vm108_vm2, %v107_v18  ;;  %256 = vmatpush1.bf16.msra.mxu0 %v255_v14 }
  0x23   :  { %257 = vmatprep.subr.bf16.mxu0 %v292_v15 }
  0x26   :  { %259 = vmatpush1.bf16.msra.mxu0 %v258_v19 }
  0x27   :  { %260 = vmatprep.subr.bf16.mxu0 %v292_v15 }
  0x2a   :  { %262 = vmatpush1.bf16.msra.mxu0 %v261_v22 }
  0x88   :  { %v88_v23 = vpop.permute.xlu0 %87 }
  0x89   :  { %v109_v25 = vsel %vm108_vm2, %v363_v34, %v88_v23 }
  0x8c   :  { %v95_v24 = vpop.permute.xlu0 %94 }
  0x8d   :  { %v111_v27 = vsel %vm110_vm3, %v109_v25, %v95_v24 }
  0x90   :  { %v102_v26 = vpop.permute.xlu1 %101 }
  0x91   :  { %v113_v28 = vsel %vm112_vm4, %v111_v27, %v102_v26 }
  0x92   :  { %201 = vmatmul.mubr.f32.vlgmr.msra.gmra.mrb[0].mxu0 %v113_v28 }
 0x165   :  { %v202_v29 = vpop.f32.mrb[0].mxu0 }
 0x166   :  { %v206_v31 = vmul.f32 0.25, %v202_v29  ;;  %v204_v15 = vpop.f32.mrb[1].mxu0 }
 0x168   :  { %v214_v32 = vadd.f32 %v232_v30, %v206_v31 }
 0x16a   :  { %216 = vst.msk [vmem:[#allocation2] sm:$0x3] %vm215_vm5, %v214_v32 }
 0x16b   :  { %279 = shalt.err (!%p276_p4)
}
 0x16c   :  { %s280_s9 = scalar_lea.hbm %s441_s3, 32 }
 0x16d   :  { %p281_p5 = scmp.ne.s32.totalorder %s441_s3, %s280_s9  ;;  %p284_p6 = scmp.lt.u32.totalorder %s280_s9, %s441_s3 }
 0x16f   :  { %p286_p7 = pnand %p284_p6, %p281_p5 }
 0x171   :  { %289 = shalt.err (!%p286_p7)
}
 0x172   :  { %226 = dma.vmem_to_hbm [thread:$0]  %s224_s5, 32, %s441_s3, [#allocation3]  }
 0x173   :  { %290 = dma.done.wait [#allocation3], 32  }
 0x174   :  { %291 = vsyncadd [#allocation3], 4294967264 }
 0x175   :  { %230 = vsyncpa [#allocation3], 1 }

</bundles_post_ra>
